<compile_context>
chip_gen: v7x
topology: tpu7x:2x2x1
jax: 0.10.0
libtpu: 0.0.40
codegen_flags: <defaults>
</compile_context>

<pallas_src>
import functools

import jax
import jax.numpy as jnp
from jax.experimental import pallas as pl
from jax.experimental.pallas import tpu as pltpu

_LANE = 128  # vreg lane width


def _gcn_kernel(*refs, reassociate, has_bias):
    """Fused GCN forward for a block of Bt graphs: out = adj @ x @ W (+ bias)."""
    if has_bias:
        x_ref, w_ref, adj_ref, b_ref, out_ref = refs
    else:
        x_ref, w_ref, adj_ref, out_ref = refs
        b_ref = None

    bt, n, f_in = x_ref.shape
    f_out_p = out_ref.shape[-1]

    x = x_ref[...]      # (bt, n, f_in)   compute dtype (bf16 or f32)
    w = w_ref[...]      # (f_in, f_out_p) compute dtype
    adj = adj_ref[...]  # (bt, n, n)      compute dtype

    if reassociate:
        # (adj @ x) @ W: the per-graph N^2 contraction runs over the narrow f_in
        # axis, then ONE fused (bt*n, f_in) @ (f_in, f_out_p) matmul presents a
        # tall LHS to the MXU (amortizes fill/drain across all bt graphs).
        ax = jnp.einsum("gnm,gmi->gni", adj, x,
                        preferred_element_type=jnp.float32)          # (bt,n,f_in) f32
        out = jnp.dot(ax.reshape(bt * n, f_in).astype(w.dtype), w,
                      preferred_element_type=jnp.float32)            # (bt*n,f_out_p)
        out = out.reshape(bt, n, f_out_p)
    else:
        # adj @ (x @ W): cheaper when padded f_out_p <= f_in.
        support = jnp.dot(x.reshape(bt * n, f_in), w,
                          preferred_element_type=jnp.float32)
        support = support.reshape(bt, n, f_out_p).astype(adj.dtype)
        out = jnp.einsum("gnm,gmf->gnf", adj, support,
                         preferred_element_type=jnp.float32)

    if b_ref is not None:
        out = out + b_ref[...]            # f32 epilogue (v5e VPU has no bf16)
    out_ref[...] = out.astype(out_ref.dtype)


def _pick_block_b(b, n, itemsize):
    """Graphs per grid step: fill the MXU but keep >=2 steps and bounded VMEM."""
    bt = min(b, max(1, pl.cdiv(256, n)))          # target >=256 LHS rows per step
    # Keep the double-buffered adj block comfortably inside the default scoped
    # VMEM budget (worst case v7x: 32 MiB scoped of 64 MiB physical).
    adj_budget = 8 * 1024 * 1024
    max_bt = max(1, adj_budget // max(1, 2 * n * n * itemsize))
    bt = min(bt, max_bt)
    # Keep >= 2 grid steps when possible so v7x's two TensorCores both get work.
    if b > 1 and pl.cdiv(b, bt) < 2:
        bt = pl.cdiv(b, 2)
    return bt


def graph_convolution_batched(x, weight, adj, bias=None, *,
                              use_bf16=True, block_b=None):
    """Batched GCN layer.

    x:      [B, N, F_in]   float32
    weight: [F_in, F_out]  float32 (shared across graphs)
    adj:    [B, N, N]      float32
    bias:   [F_out] float32 or None
    returns [B, N, F_out]  float32
    """
    b, n, f_in = x.shape
    f_in_w, f_out = weight.shape
    assert f_in == f_in_w, "weight rows must match x features"
    assert adj.shape == (b, n, n), "adj must be [B, N, N]"

    has_bias = bias is not None
    out_dtype = x.dtype

    # Lane-dense output: pad the output feature dim to a multiple of 128 so the
    # kernel's stores are unmasked full-lane vst. Padded W/bias columns are zero,
    # so the padded output columns are exactly zero and are sliced away after.
    f_out_p = pl.cdiv(f_out, _LANE) * _LANE
    if f_out_p != f_out:
        weight = jnp.pad(weight, ((0, 0), (0, f_out_p - f_out)))
        if has_bias:
            bias = jnp.pad(bias, (0, f_out_p - f_out))

    # Reassociation decision uses the PADDED output width (review fix): the
    # dominant N^2 contraction should run over min(f_in, f_out_p) lanes.
    reassociate = f_out_p > f_in

    # bf16 MXU operands (halves HBM adj traffic, native MXU rate); f32 accumulation.
    compute_dtype = jnp.bfloat16 if use_bf16 else x.dtype
    itemsize = jnp.dtype(compute_dtype).itemsize

    # Batch blocking: Bt graphs per grid step (pad B up to a multiple of Bt with
    # zero graphs; zero adj/x rows produce zeros and are sliced off afterwards).
    bt = block_b if block_b is not None else _pick_block_b(b, n, itemsize)
    b_pad = pl.cdiv(b, bt) * bt
    if b_pad != b:
        x = jnp.pad(x, ((0, b_pad - b), (0, 0), (0, 0)))
        adj = jnp.pad(adj, ((0, b_pad - b), (0, 0), (0, 0)))

    x_c = x.astype(compute_dtype)
    adj_c = adj.astype(compute_dtype)
    w_c = weight.astype(compute_dtype)

    inputs = [x_c, w_c, adj_c]
    in_specs = [
        pl.BlockSpec((bt, n, f_in), lambda g: (g, 0, 0)),
        pl.BlockSpec((f_in, f_out_p), lambda g: (0, 0)),
        pl.BlockSpec((bt, n, n), lambda g: (g, 0, 0)),
    ]
    if has_bias:
        inputs.append(bias.reshape(1, f_out_p).astype(jnp.float32))
        in_specs.append(pl.BlockSpec((1, f_out_p), lambda g: (0, 0)))

    # Advisory FLOP / byte counts for XLA's scheduler.
    if reassociate:
        flops = 2 * b_pad * n * n * f_in + 2 * b_pad * n * f_in * f_out_p
    else:
        flops = 2 * b_pad * n * f_in * f_out_p + 2 * b_pad * n * n * f_out_p
    bytes_accessed = (
        sum(int(a.size) * a.dtype.itemsize for a in inputs)
        + b_pad * n * f_out_p * jnp.dtype(out_dtype).itemsize
    )

    kernel = pl.pallas_call(
        functools.partial(_gcn_kernel, reassociate=reassociate, has_bias=has_bias),
        out_shape=jax.ShapeDtypeStruct((b_pad, n, f_out_p), out_dtype),
        grid=(b_pad // bt,),
        in_specs=in_specs,
        out_specs=pl.BlockSpec((bt, n, f_out_p), lambda g: (g, 0, 0)),
        compiler_params=pltpu.CompilerParams(
            dimension_semantics=("parallel",),
        ),
        cost_estimate=pl.CostEstimate(
            flops=flops, transcendentals=0, bytes_accessed=bytes_accessed
        ),
    )
    out = kernel(*inputs)
    return out[:b, :, :f_out]


def graph_convolution(x, weight, adj, bias=None, *, use_bf16=True):
    """Single-graph API matching GraphConvolution.forward (torch.mm semantics)."""
    return graph_convolution_batched(
        x[None], weight, adj[None], bias, use_bf16=use_bf16)[0]


def xavier_uniform(key, shape, dtype=jnp.float32):
    fan_in, fan_out = shape
    bound = (6.0 / (fan_in + fan_out)) ** 0.5
    return jax.random.uniform(key, shape, dtype, minval=-bound, maxval=bound)


if __name__ == "__main__":
    key = jax.random.PRNGKey(0)
    k_x, k_adj, k_w, k_x2, k_adj2, k_w2 = jax.random.split(key, 6)

    B = 32          # graphs batched into one pallas_call (Bt graphs per grid step)
    N = 16          # graph nodes per graph
    F_IN = 32       # in_features
    F_OUT = 64      # out_features

    # Deterministic synthetic inputs / parameters.
    x = jax.random.normal(k_x, (B, N, F_IN), jnp.float32)
    adj_raw = jax.random.uniform(k_adj, (B, N, N), jnp.float32)
    adj = adj_raw / jnp.sum(adj_raw, axis=-1, keepdims=True)   # row-normalized

    weight = xavier_uniform(k_w, (F_IN, F_OUT))                # nn.init.xavier_uniform_
    bias = jnp.zeros((F_OUT,), jnp.float32)                    # nn.init.zeros_

    ref_b = jnp.einsum("bnm,bmf->bnf", adj,
                       jnp.einsum("bni,if->bnf", x, weight)) + bias

    # ---- default bf16-operand path (bandwidth-optimized) ----
    out_bf = jax.block_until_ready(graph_convolution_batched(x, weight, adj, bias))
    assert out_bf.shape == (B, N, F_OUT) and out_bf.dtype == jnp.float32
    assert jnp.allclose(out_bf, ref_b, atol=3e-2, rtol=3e-2), "bf16 batched mismatch"

    # ---- exact f32 path ----
    out_f32 = jax.block_until_ready(
        graph_convolution_batched(x, weight, adj, bias, use_bf16=False))
    assert jnp.allclose(out_f32, ref_b, atol=1e-4, rtol=1e-4), "f32 batched mismatch"

    # ---- non-divisible batch exercises the zero-graph padding path ----
    out_odd = jax.block_until_ready(
        graph_convolution_batched(x[:5], weight, adj[:5], bias, use_bf16=False))
    assert jnp.allclose(out_odd, ref_b[:5], atol=1e-4, rtol=1e-4), "odd-batch mismatch"

    # ---- single-graph path (module-equivalent, with bias) ----
    out_1 = jax.block_until_ready(
        graph_convolution(x[0], weight, adj[0], bias, use_bf16=False))
    ref_1 = adj[0] @ (x[0] @ weight) + bias
    assert out_1.shape == (N, F_OUT)
    assert jnp.allclose(out_1, ref_1, atol=1e-4, rtol=1e-4), "single-graph mismatch"

    # ---- no-bias variant (exercises the bias-free kernel) ----
    out_nb = jax.block_until_ready(
        graph_convolution(x[0], weight, adj[0], None, use_bf16=False))
    ref_nb = adj[0] @ (x[0] @ weight)
    assert jnp.allclose(out_nb, ref_nb, atol=1e-4, rtol=1e-4), "no-bias mismatch"

    # ---- wide-F_in shapes exercise the non-reassociated (adj@(x@W)) branch ----
    F_IN2, F_OUT2, B2 = 256, 128, 8
    x2 = jax.random.normal(k_x2, (B2, N, F_IN2), jnp.float32)
    adj2_raw = jax.random.uniform(k_adj2, (B2, N, N), jnp.float32)
    adj2 = adj2_raw / jnp.sum(adj2_raw, axis=-1, keepdims=True)
    w2 = xavier_uniform(k_w2, (F_IN2, F_OUT2))
    out_2 = jax.block_until_ready(
        graph_convolution_batched(x2, w2, adj2, None, use_bf16=False))
    ref_2 = jnp.einsum("bnm,bmf->bnf", adj2, jnp.einsum("bni,if->bnf", x2, w2))
    assert jnp.allclose(out_2, ref_2, atol=1e-4, rtol=1e-4), "non-reassoc mismatch"

    print("KERNEL_OK")
</pallas_src>

<mosaic_0001>
module attributes {stable_mosaic.version = 11 : i64} {
  func.func @_gcn_kernel(%arg0: i32, %arg1: memref<16x16x32xbf16, #tpu.memory_space<vmem>>, %arg2: memref<32x128xbf16, #tpu.memory_space<vmem>>, %arg3: memref<16x16x16xbf16, #tpu.memory_space<vmem>>, %arg4: memref<1x128xf32, #tpu.memory_space<vmem>>, %arg5: memref<16x16x128xf32, #tpu.memory_space<vmem>>) attributes {dimension_semantics = [#tpu.dimension_semantics<parallel>], iteration_bounds = array<i64: 2>, scalar_prefetch = 0 : i64, scratch_operands = 0 : i64, tpu.core_type = #tpu.core_type<tc>, window_params = [{transform_indices = @transform_0, window_bounds = array<i64: 16, 16, 32>}, {pipeline_mode = #tpu.pipeline_mode<synchronous>, transform_indices = @transform_1, window_bounds = array<i64: 32, 128>}, {transform_indices = @transform_2, window_bounds = array<i64: 16, 16, 16>}, {pipeline_mode = #tpu.pipeline_mode<synchronous>, transform_indices = @transform_3, window_bounds = array<i64: 1, 128>}, {transform_indices = @transform_4, window_bounds = array<i64: 16, 16, 128>}]} {
    %c0 = arith.constant 0 : index
    %c0_0 = arith.constant 0 : index
    %c0_1 = arith.constant 0 : index
    %0 = vector.load %arg1[%c0, %c0_0, %c0_1] : memref<16x16x32xbf16, #tpu.memory_space<vmem>>, vector<16x16x32xbf16>
    %c0_2 = arith.constant 0 : index
    %c0_3 = arith.constant 0 : index
    %1 = vector.load %arg2[%c0_2, %c0_3] : memref<32x128xbf16, #tpu.memory_space<vmem>>, vector<32x128xbf16>
    %c0_4 = arith.constant 0 : index
    %c0_5 = arith.constant 0 : index
    %c0_6 = arith.constant 0 : index
    %2 = vector.load %arg3[%c0_4, %c0_5, %c0_6] : memref<16x16x16xbf16, #tpu.memory_space<vmem>>, vector<16x16x16xbf16>
    "tpu.trace_start"() <{level = 10 : i32, message = "gnm,gmi->gni"}> : () -> ()
    %cst = arith.constant dense<0.000000e+00> : vector<16x16x32xf32>
    %3 = tpu.matmul %2, %0, %cst {dimension_numbers = #tpu.dot_dimension_numbers<[2], [1], [1], [2], [0, 0, 0, 1, 1, 2], [0], [0]>} : vector<16x16x16xbf16>, vector<16x16x32xbf16>, vector<16x16x32xf32> -> vector<16x16x32xf32>
    "tpu.trace_stop"() : () -> ()
    %4 = vector.shape_cast %3 : vector<16x16x32xf32> to vector<256x32xf32>
    %5 = arith.truncf %4 : vector<256x32xf32> to vector<256x32xbf16>
    %cst_7 = arith.constant dense<0.000000e+00> : vector<256x128xf32>
    %6 = tpu.matmul %5, %1, %cst_7 {dimension_numbers = #tpu.dot_dimension_numbers<[1], [0], [0], [1], [0, 0, 1, 1], [], []>} : vector<256x32xbf16>, vector<32x128xbf16>, vector<256x128xf32> -> vector<256x128xf32>
    %7 = vector.shape_cast %6 : vector<256x128xf32> to vector<16x16x128xf32>
    %c0_8 = arith.constant 0 : index
    %c0_9 = arith.constant 0 : index
    %8 = vector.load %arg4[%c0_8, %c0_9] : memref<1x128xf32, #tpu.memory_space<vmem>>, vector<1x128xf32>
    %9 = vector.shape_cast %8 : vector<1x128xf32> to vector<1x1x128xf32>
    %10 = vector.broadcast %9 : vector<1x1x128xf32> to vector<16x16x128xf32>
    %11 = arith.addf %7, %10 : vector<16x16x128xf32>
    %c0_10 = arith.constant 0 : index
    %c0_11 = arith.constant 0 : index
    %c0_12 = arith.constant 0 : index
    %12 = vector.load %arg5[%c0_10, %c0_11, %c0_12] : memref<16x16x128xf32, #tpu.memory_space<vmem>>, vector<16x16x128xf32>
    tpu.vector_store %arg5[%c0_10, %c0_11, %c0_12], %11 {strides = array<i32>} : memref<16x16x128xf32, #tpu.memory_space<vmem>>, vector<16x16x128xf32>,
    return
  }
  func.func @transform_0(%arg0: i32) -> (i32, i32, i32) {
    %c0_i32 = arith.constant 0 : i32
    %c0_i32_0 = arith.constant 0 : i32
    %c0_i32_1 = arith.constant 0 : i32
    return %arg0, %c0_i32, %c0_i32_0 : i32, i32, i32
  }
  func.func @transform_1(%arg0: i32) -> (i32, i32) {
    %c0_i32 = arith.constant 0 : i32
    %c0_i32_0 = arith.constant 0 : i32
    %c0_i32_1 = arith.constant 0 : i32
    return %c0_i32, %c0_i32_0 : i32, i32
  }
  func.func @transform_2(%arg0: i32) -> (i32, i32, i32) {
    %c0_i32 = arith.constant 0 : i32
    %c0_i32_0 = arith.constant 0 : i32
    %c0_i32_1 = arith.constant 0 : i32
    return %arg0, %c0_i32, %c0_i32_0 : i32, i32, i32
  }
  func.func @transform_3(%arg0: i32) -> (i32, i32) {
    %c0_i32 = arith.constant 0 : i32
    %c0_i32_0 = arith.constant 0 : i32
    %c0_i32_1 = arith.constant 0 : i32
    return %c0_i32, %c0_i32_0 : i32, i32
  }
  func.func @transform_4(%arg0: i32) -> (i32, i32, i32) {
    %c0_i32 = arith.constant 0 : i32
    %c0_i32_0 = arith.constant 0 : i32
    %c0_i32_1 = arith.constant 0 : i32
    return %arg0, %c0_i32, %c0_i32_0 : i32, i32, i32
  }
}

</mosaic_0001>

<bundles_post_ra>
// kernel: tpu_custom_call.1
= control target key start
LH: loop header
LB: loop body
LE: loop exit
PB: predicated region body
PF: predicated region fallthrough
CT: control target
= control target key end

     0   :  { %9 = vsyncpa [#allocation3], 0  ;;  %s2323_s0 = inlined_call_operand.vmem [shape: bf16[32,16,32], index: 0, kind: input, shape index: {}]   ;;  %s2324_s1 = inlined_call_operand.vmem [shape: bf16[32,128], index: 1, kind: input, shape index: {}]   ;;  %s2325_s2 = inlined_call_operand.vmem [shape: bf16[32,16,16], index: 2, kind: input, shape index: {}]   ;;  %s2326_s3 = inlined_call_operand.vmem [shape: f32[1,128], index: 3, kind: input, shape index: {}]   ;;  %s2327_s4 = inlined_call_operand.hbm [shape: f32[32,16,128], index: 4, kind: output, shape index: {}]  }
   0x1   :  { %11 = vsyncpa [#allocation3 + $0x1], 0  ;;  %s2020_s15 = smov 0   ;;  %s2022_s16 = smov 0  }
   0x2   :  { %s2024_s17 = smov 0   ;;  %s2026_s18 = smov 0  }
   0x3 LB: > { %s2041_s19 = sadd.s32 4294967295, %s1988_s18   ;;  %s1575_s20 = sadd.s32 4294967294, %s1988_s18   ;;  %s1988_s18 = sphi %s2026_s18, %s2333_s18   ;;  %s1984_s17 = sphi %s2024_s17, %s2332_s17   ;;  %s1980_s16 = sphi %s2022_s16, %s2331_s16   ;;  %s1976_s15 = sphi %s2020_s15, %s2330_s15  }
   0x4   : > { %s2045_s21 = sadd.s32 1, %s1988_s18   ;;  %s118_s22 = sadd.s32 1, %s1984_s17 }
   0x5   : > { %s115_s23 = ssub.s32 %s1988_s18, %s2045_s21  ;;  %p128_p0 = scmp.ne.s32.totalorder %s1984_s17, %s1980_s16 }
   0x6   : > { %p116_p1 = scmp.eq.s32.totalorder %s115_s23, 0  ;;  %p129_p2 = scmp.eq.s32.totalorder %s2041_s19, 1 }
   0x7   : > { %p134_p3 = scmp.ne.s32.totalorder %s1980_s16, %s1976_s15  ;;  %p135_p4 = scmp.eq.s32.totalorder %s1575_s20, 1 }
   0x8   : > { %s2056_s24 = scalar_select %p116_p1, %s1984_s17, %s118_s22  }
   0x9   : > { %p2058_p5 = por %p129_p2, %p128_p0  ;;  %p2062_p6 = por %p135_p4, %p134_p3 }
   0xa   : > { %p1578_p7 = scmp.ge.s32.totalorder %s1988_s18, 1  ;;  %p179_p8 = scmp.lt.s32.totalorder %s1988_s18, 3 }
   0xc   : > { %p180_p9 = pnand %p1578_p7, %p179_p8 }
   0xd   : > { %s1580_s27 = sshll.u32 (!%p180_p9), %s2041_s19, 4  ;;  %v1990_v0 = vmov (!%p180_p9), 0.0   ;;  %vm1991_vm0 = vmmov (!%p180_p9), 0   ;;  %vm307_vm1 = vcmask (!%p180_p9), 130048   ;;  %v1924_v31 = vld [vmem:[%s2324_s1] sm:$0xff] (!%p180_p9)   ;;  %v1925_v34 = vld [vmem:[%s2324_s1 + $0x8] sm:$0xff] (!%p180_p9)  }
   0xe   : > { %183 = sbr.rel (%p180_p9) target bundleno = 533 (0x215), region = 36  ;;  %1713 = vmatprep.subr.bf16.mxu0 (!%p180_p9), %v1990_v0  ;;  %1719 = vmatprep.subr.bf16.mxu1 (!%p180_p9), %v1990_v0  ;;  %p213_p10 = scmp.lt.s32.totalorder (!%p180_p9), %s1580_s27, 31  ;;  %vm1205_vm2 = vcmask (!%p180_p9), 261120  }
   0xf   : > { %1715 = vmatprep.mubr.msk.bf16.mxu0 (!%p180_p9), %vm1991_vm0, %v1990_v0  ;;  %1721 = vmatprep.mubr.msk.bf16.mxu1 (!%p180_p9), %vm1991_vm0, %v1990_v0  ;;  %s209_s13 = sand.u32 (!%p180_p9), 1, %s1980_s16   ;;  %s1992_s7 = smov (!%p180_p9), [#allocation2]  }
  0x10   : > { %s1579_s14 = sshll.u32 (!%p180_p9), %s209_s13, 8 }
  0x11   : > { %s2207_s23 = scalar_lea.vmem (!%p180_p9), [#allocation2], %s1579_s14 }
  0x15   : > { %s2335_s27 = smov (!%p213_p10, %s1580_s27), 31 }
  0x16   : > { %s1659_s28 = sshll.u32 %s2335_s27, 3  ;;  %s1662_s27 = sshll.u32 %s2041_s19, 12 }
  0x17   : > { %s2078_s5 = scalar_lea.vmem %s2323_s0, %s1659_s28  ;;  %s2083_s8 = scalar_lea.vmem %s2325_s2, %s1659_s28 }
  0x18   : > { %v1892_v1 = vld [vmem:[%s2078_s5] sm:$0xff]   ;;  %v1893_v2 = vld [vmem:[%s2078_s5 + $0x8] sm:$0xff]   ;;  %v1896_v5 = vld [vmem:[%s2078_s5 + $0x10] sm:$0xff]   ;;  %s1501_s28 = sshll.u32 %s2207_s23, 4  ;;  %s2282_s19 = scalar_lea.sflag [#allocation3], %s209_s13  ;;  %s2274_s28 = int_to_ptr.vmem [resolvable:$true] %s1501_s28 }
  0x19   : > { %1714 = vmatpush3.bf16.msra.mxu0 %v1892_v1  ;;  %v1894_v3 = vld [vmem:[%s2083_s8] sm:$0xff]   ;;  %1720 = vmatpush3.bf16.msra.mxu1 %v1893_v2  ;;  %v1895_v4 = vld [vmem:[%s2083_s8 + $0x8] sm:$0xff]   ;;  %v1897_v6 = vld [vmem:[%s2078_s5 + $0x18] sm:$0xff]   ;;  %s1926_s6 = scalar_lea.vmem %s2274_s28, 4096 }
  0x1a   : > { %1725 = vmatprep.subr.bf16.mxu0 %v1990_v0  ;;  %1731 = vmatprep.subr.bf16.mxu1 %v1990_v0  ;;  %v1898_v7 = vld [vmem:[%s2083_s8 + $0x10] sm:$0xff]   ;;  %v1899_v8 = vld [vmem:[%s2083_s8 + $0x18] sm:$0xff]   ;;  %v1900_v9 = vld [vmem:[%s2078_s5 + $0x20] sm:$0xff]   ;;  %p1927_p11 = scmp.ne.s32.totalorder %s2274_s28, %s1926_s6 }
  0x1b   : > { %v1901_v10 = vld [vmem:[%s2078_s5 + $0x28] sm:$0xff]   ;;  %v1902_v11 = vld [vmem:[%s2083_s8 + $0x20] sm:$0xff]   ;;  %v1904_v13 = vld [vmem:[%s2078_s5 + $0x30] sm:$0xff]  }
  0x1c   : > { %1716 = vmatmul.mubr.msk.bf16.vlgmr.msra.gmra.mrb[0].mxu0 %vm307_vm1, %v1894_v3  ;;  %1722 = vmatmul.mubr.msk.bf16.vlgmr.msra.gmra.mrb[0].mxu1 %vm307_vm1, %v1895_v4  ;;  %v1903_v12 = vld [vmem:[%s2083_s8 + $0x28] sm:$0xff]   ;;  %v1905_v14 = vld [vmem:[%s2078_s5 + $0x38] sm:$0xff]   ;;  %v1906_v15 = vld [vmem:[%s2083_s8 + $0x30] sm:$0xff]   ;;  %p1928_p12 = pnand %p1927_p11, %p2058_p5 }
  0x1d   : > { %1726 = vmatpush3.bf16.msra.mxu0 %v1896_v5  ;;  %1732 = vmatpush3.bf16.msra.mxu1 %v1897_v6  ;;  %v1907_v16 = vld [vmem:[%s2083_s8 + $0x38] sm:$0xff]   ;;  %v1908_v17 = vld [vmem:[%s2078_s5 + $0x40] sm:$0xff]   ;;  %v1909_v18 = vld [vmem:[%s2078_s5 + $0x48] sm:$0xff]  }
  0x1e   : > { %1727 = vmatprep.mubr.msk.bf16.mxu0 %vm1991_vm0, %v1990_v0  ;;  %1733 = vmatprep.mubr.msk.bf16.mxu1 %vm1991_vm0, %v1990_v0  ;;  %v1910_v19 = vld [vmem:[%s2083_s8 + $0x40] sm:$0xff]   ;;  %v1911_v20 = vld [vmem:[%s2083_s8 + $0x48] sm:$0xff]   ;;  %v1912_v21 = vld [vmem:[%s2078_s5 + $0x50] sm:$0xff]   ;;  %p1929_p13 = pneg %p1928_p12 }
  0x1f   : > { %1737 = vmatprep.subr.bf16.mxu0 %v1990_v0  ;;  %1743 = vmatprep.subr.bf16.mxu1 %v1990_v0  ;;  %v1913_v22 = vld [vmem:[%s2078_s5 + $0x58] sm:$0xff]   ;;  %v1914_v23 = vld [vmem:[%s2083_s8 + $0x50] sm:$0xff]   ;;  %v1916_v25 = vld [vmem:[%s2078_s5 + $0x60] sm:$0xff]  }
  0x20   : > { %v1915_v24 = vld [vmem:[%s2083_s8 + $0x58] sm:$0xff]   ;;  %v1917_v26 = vld [vmem:[%s2078_s5 + $0x68] sm:$0xff]   ;;  %v1918_v27 = vld [vmem:[%s2083_s8 + $0x60] sm:$0xff]  }
  0x21   : > { %v1919_v28 = vld [vmem:[%s2083_s8 + $0x68] sm:$0xff]   ;;  %v1920_v29 = vld [vmem:[%s2078_s5 + $0x70] sm:$0xff]   ;;  %v1921_v30 = vld [vmem:[%s2078_s5 + $0x78] sm:$0xff]   ;;  %s2272_s5 = scalar_lea.hbm %s2327_s4, %s1662_s27 }
  0x22   : > { %v1922_v32 = vld [vmem:[%s2083_s8 + $0x70] sm:$0xff]   ;;  %v1923_v33 = vld [vmem:[%s2083_s8 + $0x78] sm:$0xff]   ;;  %s1930_s8 = sshll.u32 %s1992_s7, 4  ;;  %s1931_s8 = int_to_ptr.vmem [resolvable:$false] %s1930_s8 }
  0x23   : > { %s1932_s9 = scalar_lea.vmem %s1931_s8, 8192  ;;  %p1933_p0 = scmp.lt.s32.totalorder %s2274_s28, %s1931_s8 }
  0x24   : > { %1728 = vmatmul.mubr.msk.bf16.vlgmr.msra.gmra.mrb[4].mxu0 %vm307_vm1, %v1898_v7  ;;  %1734 = vmatmul.mubr.msk.bf16.vlgmr.msra.gmra.mrb[4].mxu1 %vm307_vm1, %v1899_v8  ;;  %p1934_p1 = scmp.lt.s32.totalorder %s1932_s9, %s1926_s6 }
  0x25   : > { %1738 = vmatpush3.bf16.msra.mxu0 %v1900_v9  ;;  %1744 = vmatpush3.bf16.msra.mxu1 %v1901_v10 }
  0x26   : > { %1739 = vmatprep.mubr.msk.bf16.mxu0 %vm1991_vm0, %v1990_v0  ;;  %1745 = vmatprep.mubr.msk.bf16.mxu1 %vm1991_vm0, %v1990_v0  ;;  %p1935_p2 = por %p1934_p1, %p1933_p0 }
  0x27   : > { %1749 = vmatprep.subr.bf16.mxu0 %v1990_v0  ;;  %1755 = vmatprep.subr.bf16.mxu1 %v1990_v0 }
  0x28   : > { %p1936_p3 = pnand %p1935_p2, %p1929_p13 }
  0x2c   : > { %1740 = vmatmul.mubr.msk.bf16.vlgmr.msra.gmra.mrb[8].mxu0 %vm307_vm1, %v1902_v11  ;;  %1746 = vmatmul.mubr.msk.bf16.vlgmr.msra.gmra.mrb[8].mxu1 %vm307_vm1, %v1903_v12 }
  0x2d   : > { %1750 = vmatpush3.bf16.msra.mxu0 %v1904_v13  ;;  %1756 = vmatpush3.bf16.msra.mxu1 %v1905_v14 }
  0x2e   : > { %1751 = vmatprep.mubr.msk.bf16.mxu0 %vm1991_vm0, %v1990_v0  ;;  %1757 = vmatprep.mubr.msk.bf16.mxu1 %vm1991_vm0, %v1990_v0 }
  0x2f   : > { %1761 = vmatprep.subr.bf16.mxu0 %v1990_v0  ;;  %1767 = vmatprep.subr.bf16.mxu1 %v1990_v0 }
  0x34   : > { %1752 = vmatmul.mubr.msk.bf16.vlgmr.msra.gmra.mrb[12].mxu0 %vm307_vm1, %v1906_v15  ;;  %1758 = vmatmul.mubr.msk.bf16.vlgmr.msra.gmra.mrb[12].mxu1 %vm307_vm1, %v1907_v16 }
  0x35   : > { %1762 = vmatpush3.bf16.msra.mxu0 %v1908_v17  ;;  %1768 = vmatpush3.bf16.msra.mxu1 %v1909_v18 }
  0x36   : > { %1763 = vmatprep.mubr.msk.bf16.mxu0 %vm1991_vm0, %v1990_v0  ;;  %1769 = vmatprep.mubr.msk.bf16.mxu1 %vm1991_vm0, %v1990_v0 }
  0x37   : > { %1773 = vmatprep.subr.bf16.mxu0 %v1990_v0  ;;  %1779 = vmatprep.subr.bf16.mxu1 %v1990_v0 }
  0x3c   : > { %1764 = vmatmul.mubr.msk.bf16.vlgmr.msra.gmra.mrb[16].mxu0 %vm307_vm1, %v1910_v19  ;;  %1770 = vmatmul.mubr.msk.bf16.vlgmr.msra.gmra.mrb[16].mxu1 %vm307_vm1, %v1911_v20 }
  0x3d   : > { %1774 = vmatpush3.bf16.msra.mxu0 %v1912_v21  ;;  %1780 = vmatpush3.bf16.msra.mxu1 %v1913_v22 }
  0x3e   : > { %1775 = vmatprep.mubr.msk.bf16.mxu0 %vm1991_vm0, %v1990_v0  ;;  %1781 = vmatprep.mubr.msk.bf16.mxu1 %vm1991_vm0, %v1990_v0 }
  0x3f   : > { %1785 = vmatprep.subr.bf16.mxu0 %v1990_v0  ;;  %1791 = vmatprep.subr.bf16.mxu1 %v1990_v0 }
  0x44   : > { %1776 = vmatmul.mubr.msk.bf16.vlgmr.msra.gmra.mrb[20].mxu0 %vm307_vm1, %v1914_v23  ;;  %1782 = vmatmul.mubr.msk.bf16.vlgmr.msra.gmra.mrb[20].mxu1 %vm307_vm1, %v1915_v24 }
  0x45   : > { %1786 = vmatpush3.bf16.msra.mxu0 %v1916_v25  ;;  %1792 = vmatpush3.bf16.msra.mxu1 %v1917_v26 }
  0x46   : > { %1787 = vmatprep.mubr.msk.bf16.mxu0 %vm1991_vm0, %v1990_v0  ;;  %1793 = vmatprep.mubr.msk.bf16.mxu1 %vm1991_vm0, %v1990_v0 }
  0x47   : > { %1797 = vmatprep.subr.bf16.mxu0 %v1990_v0  ;;  %1803 = vmatprep.subr.bf16.mxu1 %v1990_v0 }
  0x4c   : > { %1788 = vmatmul.mubr.msk.bf16.vlgmr.msra.gmra.mrb[24].mxu0 %vm307_vm1, %v1918_v27  ;;  %1794 = vmatmul.mubr.msk.bf16.vlgmr.msra.gmra.mrb[24].mxu1 %vm307_vm1, %v1919_v28 }
  0x4d   : > { %1798 = vmatpush3.bf16.msra.mxu0 %v1920_v29  ;;  %1804 = vmatpush3.bf16.msra.mxu1 %v1921_v30 }
  0x4e   : > { %1799 = vmatprep.mubr.msk.bf16.mxu0 %vm1991_vm0, %v1990_v0  ;;  %1805 = vmatprep.mubr.msk.bf16.mxu1 %vm1991_vm0, %v1990_v0 }
  0x4f   : > { %1809 = vmatprep.subr.bf16.mxu0 %v1924_v31  ;;  %1845 = vmatprep.subr.bf16.mxu1 %v1924_v31 }
  0x54   : > { %1800 = vmatmul.mubr.msk.bf16.vlgmr.msra.gmra.mrb[28].mxu0 %vm307_vm1, %v1922_v32  ;;  %1806 = vmatmul.mubr.msk.bf16.vlgmr.msra.gmra.mrb[28].mxu1 %vm307_vm1, %v1923_v33 }
  0x55   : > { %1810 = vmatpush3.bf16.msra.mxu0 %v1924_v31  ;;  %1847 = vmatpush3.bf16.msra.mxu1 %v1924_v31 }
  0x56   : > { %1811 = vmatprep.subr.bf16.mxu0 %v1925_v34  ;;  %1846 = vmatprep.subr.bf16.mxu1 %v1925_v34 }
  0x59   : > { %1812 = vmatpush3.bf16.msra.mxu0 %v1925_v34  ;;  %1848 = vmatpush3.bf16.msra.mxu1 %v1925_v34 }
  0xef   : > { %v345_v35 = vpop.f32.mrb[0].mxu0  ;;  %v400_v36 = vpop.f32.mrb[0].mxu1 }
  0xf0   : > { %v1717_v37 = vpop.f32.mrb[1].mxu0  ;;  %v1723_v38 = vpop.f32.mrb[1].mxu1 }
  0xf1   : > { %v348_v39 = vpop.f32.mrb[2].mxu0  ;;  %v403_v41 = vpop.f32.mrb[2].mxu1 }
  0xf2   : > { %v1177_v40 = vpack.c.bf16 %v348_v39, %v345_v35  ;;  %v1718_v42 = vpop.f32.mrb[3].mxu0  ;;  %v1178_v43 = vpack.c.bf16 %v403_v41, %v400_v36  ;;  %v1724_v44 = vpop.f32.mrb[3].mxu1 }
  0xf4   : > { %1813 = vmatprep.mubr.msk.bf16.mxu0 %vm1205_vm2, %v1177_v40 }
  0xf5   : > { %1814 = vmatmul.mubr.msk.bf16.vlgmr.msra.gmra.mrb[32].mxu0 %vm1205_vm2, %v1178_v43 }
  0xf7   : > { %v455_v45 = vpop.f32.mrb[4].mxu0  ;;  %v510_v46 = vpop.f32.mrb[4].mxu1 }
  0xf8   : > { %v1729_v47 = vpop.f32.mrb[5].mxu0  ;;  %v1735_v48 = vpop.f32.mrb[5].mxu1 }
  0xf9   : > { %v458_v49 = vpop.f32.mrb[6].mxu0  ;;  %v513_v51 = vpop.f32.mrb[6].mxu1 }
  0xfa   : > { %v1179_v50 = vpack.c.bf16 %v458_v49, %v455_v45  ;;  %v1730_v52 = vpop.f32.mrb[7].mxu0  ;;  %v1180_v53 = vpack.c.bf16 %v513_v51, %v510_v46  ;;  %v1736_v54 = vpop.f32.mrb[7].mxu1  ;;  %v2203_v51 = vld [vmem:[%s2326_s3] ss:$0 sm:$0xff] }
  0xfc   : > { %1817 = vmatprep.mubr.msk.bf16.mxu0 %vm1205_vm2, %v1179_v50 }
  0xfd   : > { %1818 = vmatmul.mubr.msk.bf16.gmra.mrb[36].mxu0 %vm1205_vm2, %v1180_v53 }
  0xff   : > { %v565_v55 = vpop.f32.mrb[8].mxu0  ;;  %v620_v56 = vpop.f32.mrb[8].mxu1 }
 0x100   : > { %v1741_v57 = vpop.f32.mrb[9].mxu0  ;;  %v1747_v58 = vpop.f32.mrb[9].mxu1 }
 0x101   : > { %v568_v59 = vpop.f32.mrb[10].mxu0  ;;  %v623_v61 = vpop.f32.mrb[10].mxu1 }
 0x102   : > { %v1181_v60 = vpack.c.bf16 %v568_v59, %v565_v55  ;;  %v1742_v62 = vpop.f32.mrb[11].mxu0  ;;  %v1182_v63 = vpack.c.bf16 %v623_v61, %v620_v56  ;;  %v1748_v0 = vpop.f32.mrb[11].mxu1 }
 0x104   : > { %1821 = vmatprep.mubr.msk.bf16.mxu0 %vm1205_vm2, %v1181_v60 }
 0x105   : > { %1822 = vmatmul.mubr.msk.bf16.gmra.mrb[40].mxu0 %vm1205_vm2, %v1182_v63 }
 0x107   : > { %v675_v1 = vpop.f32.mrb[12].mxu0  ;;  %v730_v2 = vpop.f32.mrb[12].mxu1 }
 0x108   : > { %v1753_v3 = vpop.f32.mrb[13].mxu0  ;;  %v1759_v4 = vpop.f32.mrb[13].mxu1 }
 0x109   : > { %v678_v5 = vpop.f32.mrb[14].mxu0  ;;  %v733_v7 = vpop.f32.mrb[14].mxu1 }
 0x10a   : > { %v1183_v6 = vpack.c.bf16 %v678_v5, %v675_v1  ;;  %v1754_v8 = vpop.f32.mrb[15].mxu0  ;;  %v1184_v9 = vpack.c.bf16 %v733_v7, %v730_v2  ;;  %v1760_v10 = vpop.f32.mrb[15].mxu1 }
 0x10c   : > { %1825 = vmatprep.mubr.msk.bf16.mxu0 %vm1205_vm2, %v1183_v6 }
 0x10d   : > { %1826 = vmatmul.mubr.msk.bf16.gmra.mrb[44].mxu0 %vm1205_vm2, %v1184_v9 }
 0x10f   : > { %v785_v11 = vpop.f32.mrb[16].mxu0  ;;  %v840_v12 = vpop.f32.mrb[16].mxu1 }
 0x110   : > { %v1765_v13 = vpop.f32.mrb[17].mxu0  ;;  %v1771_v14 = vpop.f32.mrb[17].mxu1 }
 0x111   : > { %v788_v15 = vpop.f32.mrb[18].mxu0  ;;  %v843_v17 = vpop.f32.mrb[18].mxu1 }
 0x112   : > { %v1185_v16 = vpack.c.bf16 %v788_v15, %v785_v11  ;;  %v1766_v18 = vpop.f32.mrb[19].mxu0  ;;  %v1186_v19 = vpack.c.bf16 %v843_v17, %v840_v12  ;;  %v1772_v20 = vpop.f32.mrb[19].mxu1 }
 0x114   : > { %1829 = vmatprep.mubr.msk.bf16.mxu1 %vm1205_vm2, %v1185_v16 }
 0x115   : > { %1830 = vmatmul.mubr.msk.bf16.vlgmr.msra.gmra.mrb[32].mxu1 %vm1205_vm2, %v1186_v19 }
 0x117   : > { %v895_v21 = vpop.f32.mrb[20].mxu0  ;;  %v950_v22 = vpop.f32.mrb[20].mxu1 }
 0x118   : > { %v1777_v23 = vpop.f32.mrb[21].mxu0  ;;  %v1783_v24 = vpop.f32.mrb[21].mxu1 }
 0x119   : > { %v898_v25 = vpop.f32.mrb[22].mxu0  ;;  %v953_v27 = vpop.f32.mrb[22].mxu1 }
 0x11a   : > { %v1187_v26 = vpack.c.bf16 %v898_v25, %v895_v21  ;;  %v1778_v28 = vpop.f32.mrb[23].mxu0  ;;  %v1188_v29 = vpack.c.bf16 %v953_v27, %v950_v22  ;;  %v1784_v30 = vpop.f32.mrb[23].mxu1 }
 0x11c   : > { %1833 = vmatprep.mubr.msk.bf16.mxu1 %vm1205_vm2, %v1187_v26 }
 0x11d   : > { %1834 = vmatmul.mubr.msk.bf16.gmra.mrb[36].mxu1 %vm1205_vm2, %v1188_v29 }
 0x11f   : > { %v1005_v31 = vpop.f32.mrb[24].mxu0  ;;  %v1060_v32 = vpop.f32.mrb[24].mxu1 }
 0x120   : > { %v1789_v33 = vpop.f32.mrb[25].mxu0  ;;  %v1795_v34 = vpop.f32.mrb[25].mxu1 }
 0x121   : > { %v1008_v35 = vpop.f32.mrb[26].mxu0  ;;  %v1063_v37 = vpop.f32.mrb[26].mxu1 }
 0x122   : > { %v1189_v36 = vpack.c.bf16 %v1008_v35, %v1005_v31  ;;  %v1790_v38 = vpop.f32.mrb[27].mxu0  ;;  %v1190_v39 = vpack.c.bf16 %v1063_v37, %v1060_v32  ;;  %v1796_v40 = vpop.f32.mrb[27].mxu1 }
 0x124   : > { %1837 = vmatprep.mubr.msk.bf16.mxu1 %vm1205_vm2, %v1189_v36 }
 0x125   : > { %1838 = vmatmul.mubr.msk.bf16.gmra.mrb[40].mxu1 %vm1205_vm2, %v1190_v39 }
 0x127   : > { %v1115_v41 = vpop.f32.mrb[28].mxu0  ;;  %v1170_v42 = vpop.f32.mrb[28].mxu1 }
 0x128   : > { %v1801_v43 = vpop.f32.mrb[29].mxu0  ;;  %v1807_v44 = vpop.f32.mrb[29].mxu1 }
 0x129   : > { %v1118_v45 = vpop.f32.mrb[30].mxu0  ;;  %v1173_v47 = vpop.f32.mrb[30].mxu1 }
 0x12a   : > { %v1191_v46 = vpack.c.bf16 %v1118_v45, %v1115_v41  ;;  %v1802_v48 = vpop.f32.mrb[31].mxu0  ;;  %v1192_v49 = vpack.c.bf16 %v1173_v47, %v1170_v42  ;;  %v1808_v50 = vpop.f32.mrb[31].mxu1 }
 0x12c   : > { %1841 = vmatprep.mubr.msk.bf16.mxu1 %vm1205_vm2, %v1191_v46 }
 0x12d   : > { %1842 = vmatmul.mubr.msk.bf16.gmra.mrb[44].mxu1 %vm1205_vm2, %v1192_v49 }
 0x1c8   : > { %v1815_v52 = vpop.f32.mrb[32].mxu0 }
 0x1c9   : > { %v1424_v53 = vadd.f32 %v1815_v52, %v2203_v51  ;;  %v1288_v54 = vpop.f32.mrb[33].mxu0 }
 0x1ca   : > { %v1422_v55 = vadd.f32 %v2203_v51, %v1288_v54  ;;  %v1816_v56 = vpop.f32.mrb[34].mxu0 }
 0x1cb   : > { %1456 = vst [vmem:[%s2207_s23 + $0x10] sm:$0xff] %v1424_v53  ;;  %v1425_v57 = vadd.f32 %v1816_v56, %v2203_v51  ;;  %v1291_v58 = vpop.f32.mrb[35].mxu0 }
 0x1cc   : > { %1454 = vst [vmem:[%s2207_s23] sm:$0xff] %v1422_v55  ;;  %v1423_v59 = vadd.f32 %v2203_v51, %v1291_v58 }
 0x1cd   : > { %1457 = vst [vmem:[%s2207_s23 + $0x18] sm:$0xff] %v1425_v57 }
 0x1ce   : > { %1455 = vst [vmem:[%s2207_s23 + $0x8] sm:$0xff] %v1423_v59 }
 0x1d0   : > { %v1819_v60 = vpop.f32.mrb[36].mxu0 }
 0x1d1   : > { %v1428_v61 = vadd.f32 %v1819_v60, %v2203_v51  ;;  %v1304_v62 = vpop.f32.mrb[37].mxu0 }
 0x1d2   : > { %v1426_v63 = vadd.f32 %v2203_v51, %v1304_v62  ;;  %v1820_v0 = vpop.f32.mrb[38].mxu0 }
 0x1d3   : > { %1460 = vst [vmem:[%s2207_s23 + $0x30] sm:$0xff] %v1428_v61  ;;  %v1429_v1 = vadd.f32 %v1820_v0, %v2203_v51  ;;  %v1307_v2 = vpop.f32.mrb[39].mxu0 }
 0x1d4   : > { %1458 = vst [vmem:[%s2207_s23 + $0x20] sm:$0xff] %v1426_v63  ;;  %v1427_v3 = vadd.f32 %v2203_v51, %v1307_v2 }
 0x1d5   : > { %1461 = vst [vmem:[%s2207_s23 + $0x38] sm:$0xff] %v1429_v1 }
 0x1d6   : > { %1459 = vst [vmem:[%s2207_s23 + $0x28] sm:$0xff] %v1427_v3 }
 0x1d8   : > { %v1823_v4 = vpop.f32.mrb[40].mxu0 }
 0x1d9   : > { %v1432_v5 = vadd.f32 %v1823_v4, %v2203_v51  ;;  %v1320_v6 = vpop.f32.mrb[41].mxu0 }
 0x1da   : > { %v1430_v7 = vadd.f32 %v2203_v51, %v1320_v6  ;;  %v1824_v8 = vpop.f32.mrb[42].mxu0 }
 0x1db   : > { %1464 = vst [vmem:[%s2207_s23 + $0x50] sm:$0xff] %v1432_v5  ;;  %v1433_v9 = vadd.f32 %v1824_v8, %v2203_v51  ;;  %v1323_v10 = vpop.f32.mrb[43].mxu0 }
 0x1dc   : > { %1462 = vst [vmem:[%s2207_s23 + $0x40] sm:$0xff] %v1430_v7  ;;  %v1431_v11 = vadd.f32 %v2203_v51, %v1323_v10 }
 0x1dd   : > { %1465 = vst [vmem:[%s2207_s23 + $0x58] sm:$0xff] %v1433_v9 }
 0x1de   : > { %1463 = vst [vmem:[%s2207_s23 + $0x48] sm:$0xff] %v1431_v11 }
 0x1e0   : > { %v1827_v12 = vpop.f32.mrb[44].mxu0 }
 0x1e1   : > { %v1436_v13 = vadd.f32 %v1827_v12, %v2203_v51  ;;  %v1336_v14 = vpop.f32.mrb[45].mxu0 }
 0x1e2   : > { %v1434_v15 = vadd.f32 %v2203_v51, %v1336_v14  ;;  %v1828_v16 = vpop.f32.mrb[46].mxu0 }
 0x1e3   : > { %1468 = vst [vmem:[%s2207_s23 + $0x70] sm:$0xff] %v1436_v13  ;;  %v1437_v17 = vadd.f32 %v1828_v16, %v2203_v51  ;;  %v1339_v18 = vpop.f32.mrb[47].mxu0 }
 0x1e4   : > { %1466 = vst [vmem:[%s2207_s23 + $0x60] sm:$0xff] %v1434_v15  ;;  %v1435_v19 = vadd.f32 %v2203_v51, %v1339_v18 }
 0x1e5   : > { %1469 = vst [vmem:[%s2207_s23 + $0x78] sm:$0xff] %v1437_v17 }
 0x1e6   : > { %1467 = vst [vmem:[%s2207_s23 + $0x68] sm:$0xff] %v1435_v19 }
 0x1e8   : > { %v1831_v20 = vpop.f32.mrb[32].mxu1 }
 0x1e9   : > { %v1440_v21 = vadd.f32 %v1831_v20, %v2203_v51  ;;  %v1352_v22 = vpop.f32.mrb[33].mxu1 }
 0x1ea   : > { %v1438_v23 = vadd.f32 %v2203_v51, %v1352_v22  ;;  %v1832_v24 = vpop.f32.mrb[34].mxu1 }
 0x1eb   : > { %1472 = vst [vmem:[%s2207_s23 + $0x90] sm:$0xff] %v1440_v21  ;;  %v1441_v25 = vadd.f32 %v1832_v24, %v2203_v51  ;;  %v1355_v26 = vpop.f32.mrb[35].mxu1 }
 0x1ec   : > { %1470 = vst [vmem:[%s2207_s23 + $0x80] sm:$0xff] %v1438_v23  ;;  %v1439_v27 = vadd.f32 %v2203_v51, %v1355_v26 }
 0x1ed   : > { %1473 = vst [vmem:[%s2207_s23 + $0x98] sm:$0xff] %v1441_v25 }
 0x1ee   : > { %1471 = vst [vmem:[%s2207_s23 + $0x88] sm:$0xff] %v1439_v27 }
 0x1f0   : > { %v1835_v28 = vpop.f32.mrb[36].mxu1 }
 0x1f1   : > { %v1444_v29 = vadd.f32 %v1835_v28, %v2203_v51  ;;  %v1368_v30 = vpop.f32.mrb[37].mxu1 }
 0x1f2   : > { %v1442_v31 = vadd.f32 %v2203_v51, %v1368_v30  ;;  %v1836_v32 = vpop.f32.mrb[38].mxu1 }
 0x1f3   : > { %1476 = vst [vmem:[%s2207_s23 + $0xb0] sm:$0xff] %v1444_v29  ;;  %v1445_v33 = vadd.f32 %v1836_v32, %v2203_v51  ;;  %v1371_v34 = vpop.f32.mrb[39].mxu1 }
 0x1f4   : > { %1474 = vst [vmem:[%s2207_s23 + $0xa0] sm:$0xff] %v1442_v31  ;;  %v1443_v35 = vadd.f32 %v2203_v51, %v1371_v34 }
 0x1f5   : > { %1477 = vst [vmem:[%s2207_s23 + $0xb8] sm:$0xff] %v1445_v33 }
 0x1f6   : > { %1475 = vst [vmem:[%s2207_s23 + $0xa8] sm:$0xff] %v1443_v35 }
 0x1f8   : > { %v1839_v36 = vpop.f32.mrb[40].mxu1 }
 0x1f9   : > { %v1448_v37 = vadd.f32 %v1839_v36, %v2203_v51  ;;  %v1384_v38 = vpop.f32.mrb[41].mxu1 }
 0x1fa   : > { %v1446_v39 = vadd.f32 %v2203_v51, %v1384_v38  ;;  %v1840_v40 = vpop.f32.mrb[42].mxu1 }
 0x1fb   : > { %1480 = vst [vmem:[%s2207_s23 + $0xd0] sm:$0xff] %v1448_v37  ;;  %v1449_v41 = vadd.f32 %v1840_v40, %v2203_v51  ;;  %v1387_v42 = vpop.f32.mrb[43].mxu1 }
 0x1fc   : > { %1478 = vst [vmem:[%s2207_s23 + $0xc0] sm:$0xff] %v1446_v39  ;;  %v1447_v43 = vadd.f32 %v2203_v51, %v1387_v42 }
 0x1fd   : > { %1481 = vst [vmem:[%s2207_s23 + $0xd8] sm:$0xff] %v1449_v41 }
 0x1fe   : > { %1479 = vst [vmem:[%s2207_s23 + $0xc8] sm:$0xff] %v1447_v43 }
 0x200   : > { %v1843_v44 = vpop.f32.mrb[44].mxu1 }
 0x201   : > { %v1452_v45 = vadd.f32 %v1843_v44, %v2203_v51  ;;  %v1400_v46 = vpop.f32.mrb[45].mxu1 }
 0x202   : > { %v1450_v47 = vadd.f32 %v2203_v51, %v1400_v46  ;;  %v1844_v48 = vpop.f32.mrb[46].mxu1 }
 0x203   : > { %1484 = vst [vmem:[%s2207_s23 + $0xf0] sm:$0xff] %v1452_v45  ;;  %v1453_v49 = vadd.f32 %v1844_v48, %v2203_v51  ;;  %v1403_v50 = vpop.f32.mrb[47].mxu1 }
 0x204   : > { %1482 = vst [vmem:[%s2207_s23 + $0xe0] sm:$0xff] %v1450_v47  ;;  %v1451_v52 = vadd.f32 %v2203_v51, %v1403_v50 }
 0x205   : > { %1485 = vst [vmem:[%s2207_s23 + $0xf8] sm:$0xff] %v1453_v49 }
 0x206   : > { %1483 = vst [vmem:[%s2207_s23 + $0xe8] sm:$0xff] %v1451_v52 }
 0x207   : > { %1939 = shalt.err (!%p1936_p3)
}
 0x208   : > { %s1940_s10 = scalar_lea.hbm %s2272_s5, 4096  ;;  %s1944_s13 = scalar_lea.hbm %s2327_s4, 8192 }
 0x209   : > { %p1941_p4 = scmp.ne.s32.totalorder %s2272_s5, %s1940_s10  ;;  %p1945_p9 = scmp.lt.u32.totalorder %s2272_s5, %s2327_s4 }
 0x20a   : > { %p1946_p10 = scmp.lt.u32.totalorder %s1944_s13, %s1940_s10  ;;  %p1948_p12 = scmp.lt.u32.totalorder %s1940_s10, %s2272_s5 }
 0x20b   : > { %p1942_p7 = pnand %p1941_p4, %p2058_p5 }
 0x20c   : > { %p1947_p11 = por %p1946_p10, %p1945_p9 }
 0x20d   : > { %p1943_p8 = pneg %p1942_p7 }
 0x20e   : > { %p1949_p13 = por %p1948_p12, %p1947_p11 }
 0x210   : > { %p1950_p0 = pnand %p1949_p13, %p1943_p8 }
 0x212   : > { %1953 = shalt.err (!%p1950_p0)
}
 0x213   : > { %s1993_s22 = smov 128   ;;  %s1994_s23 = smov 8  }
 0x214   : > { %1849 = dma.vmem_to_hbm [thread:$0]  (%p2058_p5), %s2274_s28, 4096, %s2272_s5, %s2282_s19, %s1993_s22, %s1993_s22, %s1994_s23  }
 0x215 PF: > { %p1855_p1 = scmp.ge.s32.totalorder %s1988_s18, 2  ;;  %s1516_s27 = sand.u32 1, %s1976_s15  }
 0x216   : > { %s1517_s29 = scalar_lea.sflag [#allocation3], %s1516_s27 }
 0x217   : > { %p1852_p2 = pnand %p1855_p1, %p2062_p6 }
 0x219   : > { %1971 = dma.done.wait (!%p1852_p2), %s1517_s29, 4096  }
 0x21a   : > { %1973 = vsyncadd (!%p1852_p2), %s1517_s29, 4294963200  ;;  %p14_p3 = scmp.ge.s32.totalorder %s2045_s21, 4   ;;  %s2330_s15 = smov %s1980_s16 }
 0x21b   : > { %s2331_s16 = smov %s1984_s17  ;;  %s2332_s17 = smov %s2056_s24 }
 0x21c   : > { %s2333_s18 = smov %s2045_s21  ;;  %16 = sbr.rel (!%p14_p3) target bundleno = 3 (0x3), region = 74 }
 0x223   :  { %1522 = vsyncpa [#allocation3], 1 }
 0x224   :  { %1524 = vsyncpa [#allocation3 + $0x1], 1 }

</bundles_post_ra>
